<compile_context>
chip_gen: v6e
topology: v6e:2x2x1
jax: 0.10.0
libtpu: 0.0.40
codegen_flags: <defaults>
</compile_context>

<pallas_src>
import functools
import math

import jax
import jax.numpy as jnp
from jax.experimental import pallas as pl
from jax.experimental.pallas import tpu as pltpu

_SUBLANE = 8    # sublane width (second-last dim granularity)


def _round_up(x, m):
    return (x + m - 1) // m * m


def _gelu_exact(x):
    # torch.nn.GELU() default: 0.5 * x * (1 + erf(x / sqrt(2)))
    inv_sqrt2 = jnp.float32(1.0 / math.sqrt(2.0))
    return 0.5 * x * (1.0 + jax.lax.erf(x * inv_sqrt2))


def _mlp_kernel(x_ref, w_pre_ref, b_pre_ref, w_hid_ref, b_hid_ref,
                w_post_ref, b_post_ref, o_ref, *, n_layers, res, mxu_dtype):
    # x_ref: (TM, Din); weight refs hold the full (unpadded) arrays in VMEM,
    # already in mxu_dtype.  Activations are kept in f32 (residual chain, bias
    # add, GELU) and cast to mxu_dtype only at the MXU inputs.
    x = x_ref[...]

    # linear_pre + act
    h = jnp.dot(x.astype(mxu_dtype), w_pre_ref[...],
                preferred_element_type=jnp.float32)
    h = _gelu_exact(h + b_pre_ref[...].astype(jnp.float32))

    # hidden layers (static unroll; n_layers is a trace-time constant)
    for l in range(n_layers):
        y = jnp.dot(h.astype(mxu_dtype), w_hid_ref[l],
                    preferred_element_type=jnp.float32)
        y = _gelu_exact(y + b_hid_ref[l].astype(jnp.float32))
        h = y + h if res else y

    # linear_post
    out = jnp.dot(h.astype(mxu_dtype), w_post_ref[...],
                  preferred_element_type=jnp.float32)
    out = out + b_post_ref[...].astype(jnp.float32)
    o_ref[...] = out.astype(o_ref.dtype)


def mlp_pallas(x, params, *, n_layers, res=True, tm=1024, mxu_bf16=True):
    """x: [B, N, Din] -> [B, N, Dout].

    tm       : row tile (sweep 512-1024 for streaming shapes).
    mxu_bf16 : cast MXU operands to bf16 (f32 accumulation).  Set False for
               bit-exact f32 semantics.
    """
    w_pre, b_pre, w_hid, b_hid, w_post, b_post = params
    B, N, Din = x.shape
    H = w_pre.shape[1]
    Dout = w_post.shape[1]
    rows = B * N

    mxu_dtype = jnp.bfloat16 if mxu_bf16 else jnp.float32

    # Weights live resident in VMEM; store them directly in the MXU dtype so
    # no per-step cast (and half the weight DMA bytes when bf16).
    w_pre_k = w_pre.astype(mxu_dtype)
    w_post_k = w_post.astype(mxu_dtype)
    if n_layers > 0:
        w_hid_k = w_hid.astype(mxu_dtype)
        b_hid_k = b_hid
    else:
        # Guard: a zero-extent BlockSpec fails at lowering; pass a dummy block
        # that the (empty) unrolled loop never touches.
        w_hid_k = jnp.zeros((1, H, H), mxu_dtype)
        b_hid_k = jnp.zeros((1, 1, H), jnp.float32)
    nl_blk = max(n_layers, 1)

    # Row tile: as large as useful, but guarantee the 1-D "parallel" grid has
    # at least 2 steps so v7x's two TensorCores both get work.
    tm_eff = max(_SUBLANE, min(tm, _round_up(pl.cdiv(rows, 2), _SUBLANE)))
    grid = (pl.cdiv(rows, tm_eff),)   # ragged last tile is masked by Pallas

    x2 = x.reshape(rows, Din)

    kernel = functools.partial(_mlp_kernel, n_layers=n_layers, res=res,
                               mxu_dtype=mxu_dtype)

    out2 = pl.pallas_call(
        kernel,
        out_shape=jax.ShapeDtypeStruct((rows, Dout), x.dtype),
        grid=grid,
        in_specs=[
            pl.BlockSpec((tm_eff, Din), lambda i: (i, 0)),            # x tile
            pl.BlockSpec((Din, H), lambda i: (0, 0)),                 # W_pre
            pl.BlockSpec((1, H), lambda i: (0, 0)),                   # b_pre
            pl.BlockSpec((nl_blk, H, H), lambda i: (0, 0, 0)),        # W_hid
            pl.BlockSpec((nl_blk, 1, H), lambda i: (0, 0, 0)),        # b_hid
            pl.BlockSpec((H, Dout), lambda i: (0, 0)),                # W_post
            pl.BlockSpec((1, Dout), lambda i: (0, 0)),                # b_post
        ],
        out_specs=pl.BlockSpec((tm_eff, Dout), lambda i: (i, 0)),
        compiler_params=pltpu.CompilerParams(
            dimension_semantics=("parallel",)),
    )(x2, w_pre_k, b_pre, w_hid_k, b_hid_k, w_post_k, b_post)

    return out2.reshape(B, N, Dout)


def init_mlp_params(key, n_input, n_hidden, n_output, n_layers):
    """Deterministic init mirroring torch.nn.Linear (uniform ±1/sqrt(fan_in))."""
    keys = jax.random.split(key, 6)

    def uni(k, shape, fan_in):
        bound = 1.0 / math.sqrt(fan_in)
        return jax.random.uniform(k, shape, jnp.float32, -bound, bound)

    w_pre = uni(keys[0], (n_input, n_hidden), n_input)
    b_pre = uni(keys[1], (1, n_hidden), n_input)
    w_hid = uni(keys[2], (n_layers, n_hidden, n_hidden), n_hidden)
    b_hid = uni(keys[3], (n_layers, 1, n_hidden), n_hidden)
    w_post = uni(keys[4], (n_hidden, n_output), n_hidden)
    b_post = uni(keys[5], (1, n_output), n_hidden)
    return (w_pre, b_pre, w_hid, b_hid, w_post, b_post)


def mlp_ref(x, params, *, n_layers, res=True, mxu_dtype=jnp.float32):
    """Pure-JAX reference for validation (optionally bf16 MXU operands)."""
    w_pre, b_pre, w_hid, b_hid, w_post, b_post = params

    def dot(a, w):
        return jnp.dot(a.astype(mxu_dtype), w.astype(mxu_dtype),
                       preferred_element_type=jnp.float32)

    h = _gelu_exact(dot(x, w_pre) + b_pre)
    for l in range(n_layers):
        y = _gelu_exact(dot(h, w_hid[l]) + b_hid[l])
        h = y + h if res else y
    return dot(h, w_post) + b_post


if __name__ == "__main__":
    # Small shapes consistent with Transolver MLP usage: [B, N_tokens, C].
    B, N = 2, 8
    n_input, n_hidden, n_output, n_layers = 32, 64, 32, 2

    key = jax.random.PRNGKey(0)
    kx, kp = jax.random.split(key)
    x = jax.random.normal(kx, (B, N, n_input), jnp.float32)
    params = init_mlp_params(kp, n_input, n_hidden, n_output, n_layers)

    # Fast path (bf16 MXU operands, f32 accumulation) -- default.
    out_fast = jax.block_until_ready(
        mlp_pallas(x, params, n_layers=n_layers, res=True))
    # Exact f32 path for strict semantic validation vs. the module.
    out_exact = jax.block_until_ready(
        mlp_pallas(x, params, n_layers=n_layers, res=True, mxu_bf16=False))

    ref_f32 = mlp_ref(x, params, n_layers=n_layers, res=True)
    ref_bf16 = mlp_ref(x, params, n_layers=n_layers, res=True,
                       mxu_dtype=jnp.bfloat16)

    assert out_fast.shape == (B, N, n_output)
    assert out_exact.shape == (B, N, n_output)
    assert jnp.allclose(out_exact, ref_f32, atol=1e-4, rtol=1e-4)
    assert jnp.allclose(out_fast, ref_bf16, atol=1e-3, rtol=1e-3)
    assert jnp.allclose(out_fast, ref_f32, atol=5e-2, rtol=5e-2)

    print("KERNEL_OK")
</pallas_src>

<mosaic_0001>
module attributes {stable_mosaic.version = 11 : i64} {
  func.func @_mlp_kernel(%arg0: i32, %arg1: memref<8x32xf32, #tpu.memory_space<vmem>>, %arg2: memref<32x64xbf16, #tpu.memory_space<vmem>>, %arg3: memref<1x64xf32, #tpu.memory_space<vmem>>, %arg4: memref<2x64x64xbf16, #tpu.memory_space<vmem>>, %arg5: memref<2x1x64xf32, #tpu.memory_space<vmem>>, %arg6: memref<64x32xbf16, #tpu.memory_space<vmem>>, %arg7: memref<1x32xf32, #tpu.memory_space<vmem>>, %arg8: memref<8x32xf32, #tpu.memory_space<vmem>>) attributes {dimension_semantics = [#tpu.dimension_semantics<parallel>], iteration_bounds = array<i64: 2>, scalar_prefetch = 0 : i64, scratch_operands = 0 : i64, tpu.core_type = #tpu.core_type<tc>, window_params = [{transform_indices = @transform_0, window_bounds = array<i64: 8, 32>}, {pipeline_mode = #tpu.pipeline_mode<synchronous>, transform_indices = @transform_1, window_bounds = array<i64: 32, 64>}, {pipeline_mode = #tpu.pipeline_mode<synchronous>, transform_indices = @transform_2, window_bounds = array<i64: 1, 64>}, {pipeline_mode = #tpu.pipeline_mode<synchronous>, transform_indices = @transform_3, window_bounds = array<i64: 2, 64, 64>}, {pipeline_mode = #tpu.pipeline_mode<synchronous>, transform_indices = @transform_4, window_bounds = array<i64: 2, 1, 64>}, {pipeline_mode = #tpu.pipeline_mode<synchronous>, transform_indices = @transform_5, window_bounds = array<i64: 64, 32>}, {pipeline_mode = #tpu.pipeline_mode<synchronous>, transform_indices = @transform_6, window_bounds = array<i64: 1, 32>}, {transform_indices = @transform_7, window_bounds = array<i64: 8, 32>}]} {
    %c0 = arith.constant 0 : index
    %c0_0 = arith.constant 0 : index
    %0 = vector.load %arg1[%c0, %c0_0] : memref<8x32xf32, #tpu.memory_space<vmem>>, vector<8x32xf32>
    %1 = arith.truncf %0 : vector<8x32xf32> to vector<8x32xbf16>
    %c0_1 = arith.constant 0 : index
    %c0_2 = arith.constant 0 : index
    %2 = vector.load %arg2[%c0_1, %c0_2] : memref<32x64xbf16, #tpu.memory_space<vmem>>, vector<32x64xbf16>
    %cst = arith.constant dense<0.000000e+00> : vector<8x64xf32>
    %3 = tpu.matmul %1, %2, %cst {dimension_numbers = #tpu.dot_dimension_numbers<[1], [0], [0], [1], [0, 0, 1, 1], [], []>} : vector<8x32xbf16>, vector<32x64xbf16>, vector<8x64xf32> -> vector<8x64xf32>
    %c0_3 = arith.constant 0 : index
    %c0_4 = arith.constant 0 : index
    %4 = vector.load %arg3[%c0_3, %c0_4] : memref<1x64xf32, #tpu.memory_space<vmem>>, vector<1x64xf32>
    %5 = vector.broadcast %4 : vector<1x64xf32> to vector<8x64xf32>
    %6 = arith.addf %3, %5 : vector<8x64xf32>
    %cst_5 = arith.constant 5.000000e-01 : f32
    %7 = vector.broadcast %cst_5 : f32 to vector<8x64xf32>
    %8 = arith.mulf %7, %6 : vector<8x64xf32>
    %cst_6 = arith.constant 0.707106769 : f32
    %9 = vector.broadcast %cst_6 : f32 to vector<8x64xf32>
    %10 = arith.mulf %6, %9 : vector<8x64xf32>
    %11 = math.erf %10 : vector<8x64xf32>
    %cst_7 = arith.constant 1.000000e+00 : f32
    %12 = vector.broadcast %cst_7 : f32 to vector<8x64xf32>
    %13 = arith.addf %12, %11 : vector<8x64xf32>
    %14 = arith.mulf %8, %13 : vector<8x64xf32>
    %15 = arith.truncf %14 : vector<8x64xf32> to vector<8x64xbf16>
    %c0_8 = arith.constant 0 : index
    %c0_9 = arith.constant 0 : index
    %c0_10 = arith.constant 0 : index
    %16 = vector.load %arg4[%c0_8, %c0_9, %c0_10] : memref<2x64x64xbf16, #tpu.memory_space<vmem>>, vector<1x64x64xbf16>
    %17 = vector.shape_cast %16 : vector<1x64x64xbf16> to vector<64x64xbf16>
    %cst_11 = arith.constant dense<0.000000e+00> : vector<8x64xf32>
    %18 = tpu.matmul %15, %17, %cst_11 {dimension_numbers = #tpu.dot_dimension_numbers<[1], [0], [0], [1], [0, 0, 1, 1], [], []>} : vector<8x64xbf16>, vector<64x64xbf16>, vector<8x64xf32> -> vector<8x64xf32>
    %c0_12 = arith.constant 0 : index
    %c0_13 = arith.constant 0 : index
    %c0_14 = arith.constant 0 : index
    %19 = vector.load %arg5[%c0_12, %c0_13, %c0_14] : memref<2x1x64xf32, #tpu.memory_space<vmem>>, vector<1x1x64xf32>
    %20 = vector.shape_cast %19 : vector<1x1x64xf32> to vector<1x64xf32>
    %21 = vector.broadcast %20 : vector<1x64xf32> to vector<8x64xf32>
    %22 = arith.addf %18, %21 : vector<8x64xf32>
    %cst_15 = arith.constant 5.000000e-01 : f32
    %23 = vector.broadcast %cst_15 : f32 to vector<8x64xf32>
    %24 = arith.mulf %23, %22 : vector<8x64xf32>
    %cst_16 = arith.constant 0.707106769 : f32
    %25 = vector.broadcast %cst_16 : f32 to vector<8x64xf32>
    %26 = arith.mulf %22, %25 : vector<8x64xf32>
    %27 = math.erf %26 : vector<8x64xf32>
    %cst_17 = arith.constant 1.000000e+00 : f32
    %28 = vector.broadcast %cst_17 : f32 to vector<8x64xf32>
    %29 = arith.addf %28, %27 : vector<8x64xf32>
    %30 = arith.mulf %24, %29 : vector<8x64xf32>
    %31 = arith.addf %30, %14 : vector<8x64xf32>
    %32 = arith.truncf %31 : vector<8x64xf32> to vector<8x64xbf16>
    %c1 = arith.constant 1 : index
    %c0_18 = arith.constant 0 : index
    %c0_19 = arith.constant 0 : index
    %33 = vector.load %arg4[%c1, %c0_18, %c0_19] : memref<2x64x64xbf16, #tpu.memory_space<vmem>>, vector<1x64x64xbf16>
    %34 = vector.shape_cast %33 : vector<1x64x64xbf16> to vector<64x64xbf16>
    %cst_20 = arith.constant dense<0.000000e+00> : vector<8x64xf32>
    %35 = tpu.matmul %32, %34, %cst_20 {dimension_numbers = #tpu.dot_dimension_numbers<[1], [0], [0], [1], [0, 0, 1, 1], [], []>} : vector<8x64xbf16>, vector<64x64xbf16>, vector<8x64xf32> -> vector<8x64xf32>
    %c1_21 = arith.constant 1 : index
    %c0_22 = arith.constant 0 : index
    %c0_23 = arith.constant 0 : index
    %36 = vector.load %arg5[%c1_21, %c0_22, %c0_23] : memref<2x1x64xf32, #tpu.memory_space<vmem>>, vector<1x1x64xf32>
    %37 = vector.shape_cast %36 : vector<1x1x64xf32> to vector<1x64xf32>
    %38 = vector.broadcast %37 : vector<1x64xf32> to vector<8x64xf32>
    %39 = arith.addf %35, %38 : vector<8x64xf32>
    %cst_24 = arith.constant 5.000000e-01 : f32
    %40 = vector.broadcast %cst_24 : f32 to vector<8x64xf32>
    %41 = arith.mulf %40, %39 : vector<8x64xf32>
    %cst_25 = arith.constant 0.707106769 : f32
    %42 = vector.broadcast %cst_25 : f32 to vector<8x64xf32>
    %43 = arith.mulf %39, %42 : vector<8x64xf32>
    %44 = math.erf %43 : vector<8x64xf32>
    %cst_26 = arith.constant 1.000000e+00 : f32
    %45 = vector.broadcast %cst_26 : f32 to vector<8x64xf32>
    %46 = arith.addf %45, %44 : vector<8x64xf32>
    %47 = arith.mulf %41, %46 : vector<8x64xf32>
    %48 = arith.addf %47, %31 : vector<8x64xf32>
    %49 = arith.truncf %48 : vector<8x64xf32> to vector<8x64xbf16>
    %c0_27 = arith.constant 0 : index
    %c0_28 = arith.constant 0 : index
    %50 = vector.load %arg6[%c0_27, %c0_28] : memref<64x32xbf16, #tpu.memory_space<vmem>>, vector<64x32xbf16>
    %cst_29 = arith.constant dense<0.000000e+00> : vector<8x32xf32>
    %51 = tpu.matmul %49, %50, %cst_29 {dimension_numbers = #tpu.dot_dimension_numbers<[1], [0], [0], [1], [0, 0, 1, 1], [], []>} : vector<8x64xbf16>, vector<64x32xbf16>, vector<8x32xf32> -> vector<8x32xf32>
    %c0_30 = arith.constant 0 : index
    %c0_31 = arith.constant 0 : index
    %52 = vector.load %arg7[%c0_30, %c0_31] : memref<1x32xf32, #tpu.memory_space<vmem>>, vector<1x32xf32>
    %53 = vector.broadcast %52 : vector<1x32xf32> to vector<8x32xf32>
    %54 = arith.addf %51, %53 : vector<8x32xf32>
    %c0_32 = arith.constant 0 : index
    %c0_33 = arith.constant 0 : index
    %55 = vector.load %arg8[%c0_32, %c0_33] : memref<8x32xf32, #tpu.memory_space<vmem>>, vector<8x32xf32>
    tpu.vector_store %arg8[%c0_32, %c0_33], %54 {strides = array<i32>} : memref<8x32xf32, #tpu.memory_space<vmem>>, vector<8x32xf32>,
    return
  }
  func.func @transform_0(%arg0: i32) -> (i32, i32) {
    %c0_i32 = arith.constant 0 : i32
    %c0_i32_0 = arith.constant 0 : i32
    return %arg0, %c0_i32 : i32, i32
  }
  func.func @transform_1(%arg0: i32) -> (i32, i32) {
    %c0_i32 = arith.constant 0 : i32
    %c0_i32_0 = arith.constant 0 : i32
    %c0_i32_1 = arith.constant 0 : i32
    return %c0_i32, %c0_i32_0 : i32, i32
  }
  func.func @transform_2(%arg0: i32) -> (i32, i32) {
    %c0_i32 = arith.constant 0 : i32
    %c0_i32_0 = arith.constant 0 : i32
    %c0_i32_1 = arith.constant 0 : i32
    return %c0_i32, %c0_i32_0 : i32, i32
  }
  func.func @transform_3(%arg0: i32) -> (i32, i32, i32) {
    %c0_i32 = arith.constant 0 : i32
    %c0_i32_0 = arith.constant 0 : i32
    %c0_i32_1 = arith.constant 0 : i32
    %c0_i32_2 = arith.constant 0 : i32
    return %c0_i32, %c0_i32_0, %c0_i32_1 : i32, i32, i32
  }
  func.func @transform_4(%arg0: i32) -> (i32, i32, i32) {
    %c0_i32 = arith.constant 0 : i32
    %c0_i32_0 = arith.constant 0 : i32
    %c0_i32_1 = arith.constant 0 : i32
    %c0_i32_2 = arith.constant 0 : i32
    return %c0_i32, %c0_i32_0, %c0_i32_1 : i32, i32, i32
  }
  func.func @transform_5(%arg0: i32) -> (i32, i32) {
    %c0_i32 = arith.constant 0 : i32
    %c0_i32_0 = arith.constant 0 : i32
    %c0_i32_1 = arith.constant 0 : i32
    return %c0_i32, %c0_i32_0 : i32, i32
  }
  func.func @transform_6(%arg0: i32) -> (i32, i32) {
    %c0_i32 = arith.constant 0 : i32
    %c0_i32_0 = arith.constant 0 : i32
    %c0_i32_1 = arith.constant 0 : i32
    return %c0_i32, %c0_i32_0 : i32, i32
  }
  func.func @transform_7(%arg0: i32) -> (i32, i32) {
    %c0_i32 = arith.constant 0 : i32
    %c0_i32_0 = arith.constant 0 : i32
    return %arg0, %c0_i32 : i32, i32
  }
}

</mosaic_0001>

<bundles_post_ra>
// kernel: tpu_custom_call.1
= control target key start
LH: loop header
LB: loop body
LE: loop exit
PB: predicated region body
PF: predicated region fallthrough
CT: control target
= control target key end

     0   :  { %12 = vsyncpa [#allocation3], 0  ;;  %s1197_s0 = inlined_call_operand.vmem [shape: f32[16,32], index: 0, kind: input, shape index: {}]   ;;  %s1198_s1 = inlined_call_operand.vmem [shape: bf16[32,64], index: 1, kind: input, shape index: {}]   ;;  %s1199_s2 = inlined_call_operand.vmem [shape: f32[1,64], index: 2, kind: input, shape index: {}]   ;;  %s1200_s3 = inlined_call_operand.hbm [shape: bf16[2,64,64], index: 3, kind: input, shape index: {}]   ;;  %s1201_s4 = inlined_call_operand.vmem [shape: f32[2,1,64], index: 4, kind: input, shape index: {}]   ;;  %s1202_s5 = inlined_call_operand.vmem [shape: bf16[64,32], index: 5, kind: input, shape index: {}]   ;;  %s1203_s6 = inlined_call_operand.vmem [shape: f32[1,32], index: 6, kind: input, shape index: {}]   ;;  %s1204_s7 = inlined_call_operand.hbm [shape: f32[16,32], index: 7, kind: output, shape index: {}]  }
   0x1   :  { %13 = vsyncpa [#allocation4], 0 }
   0x2   :  { %15 = vsyncpa [#allocation4 + $0x1], 0  ;;  %s1023_s24 = smov 0   ;;  %s1025_s25 = smov 0  }
   0x3   :  { %s1027_s26 = smov 0   ;;  %s1029_s27 = smov 0  }
   0x4 LB: > { %s1044_s28 = sadd.s32 4294967295, %s975_s27   ;;  %s714_s29 = sadd.s32 4294967294, %s975_s27   ;;  %s975_s27 = sphi %s1029_s27, %s1212_s27   ;;  %s971_s26 = sphi %s1027_s26, %s1211_s26   ;;  %s967_s25 = sphi %s1025_s25, %s1210_s25   ;;  %s963_s24 = sphi %s1023_s24, %s1209_s24  }
   0x5   : > { %s1048_s30 = sadd.s32 1, %s975_s27   ;;  %s180_s8 = sadd.s32 1, %s971_s26 }
   0x6   : > { %s177_s9 = ssub.s32 %s975_s27, %s1048_s30  ;;  %p190_p0 = scmp.ne.s32.totalorder %s971_s26, %s967_s25 }
   0x7   : > { %p178_p1 = scmp.eq.s32.totalorder %s177_s9, 0  ;;  %p191_p2 = scmp.eq.s32.totalorder %s1044_s28, 1 }
   0x8   : > { %p196_p3 = scmp.ne.s32.totalorder %s967_s25, %s963_s24  ;;  %p197_p4 = scmp.eq.s32.totalorder %s714_s29, 1 }
   0x9   : > { %s1059_s10 = scalar_select %p178_p1, %s971_s26, %s180_s8  }
   0xa   : > { %p1061_p5 = por %p191_p2, %p190_p0  ;;  %p1065_p6 = por %p197_p4, %p196_p3 }
   0xb   : > { %p715_p7 = scmp.ge.s32.totalorder %s975_s27, 1  ;;  %p204_p8 = scmp.lt.s32.totalorder %s975_s27, 3 }
   0xc   : > { %s1206_s12 = scalar_select %p1065_p6, 1, 0 }
   0xd   : > { %p825_p9 = scmp.eq.s32.totalorder %s1044_s28, 0  ;;  %p1072_p10 = pnand %p715_p7, %p204_p8 }
   0xe   : > { %s977_s14 = smov [#allocation2]  }
   0xf   : > { %s222_s15 = sshll.u32 %s977_s14, 4  ;;  %p817_p11 = pneg %p1072_p10  ;;  %s223_s15 = int_to_ptr.vmem [resolvable:$true] %s222_s15 }
  0x10   : > { %s896_s16 = scalar_lea.vmem %s223_s15, 1024  ;;  %p904_p3 = scmp.lt.s32.totalorder %s223_s15, %s223_s15 }
  0x11   : > { %p818_p12 = pnand %p825_p9, %p817_p11  ;;  %p897_p0 = scmp.ne.s32.totalorder %s223_s15, %s896_s16 }
  0x12   : > { %p905_p4 = scmp.lt.s32.totalorder %s896_s16, %s896_s16 }
  0x13   : > { %p887_p13 = pneg %p818_p12 }
  0x14   : > { %p906_p6 = por %p905_p4, %p904_p3 }
  0x15   : > { %p899_p1 = pnand %p897_p0, %p887_p13 }
  0x17   : > { %p900_p2 = pneg %p899_p1 }
  0x19   : > { %p907_p7 = pnand %p906_p6, %p900_p2 }
  0x1b   : > { %910 = shalt.err (!%p907_p7)
}
  0x1c   : > { %s978_s17 = smov 64   ;;  %s979_s18 = smov 4  }
  0x1d   : > { %820 = dma.hbm_to_vmem [thread:$0]  (!%p818_p12), %s1200_s3, 1024, %s223_s15, [#allocation3], %s978_s17, %s978_s17, %s979_s18  }
  0x1e   : > { %254 = sbr.rel (%p1072_p10) target bundleno = 910 (0x38e), region = 48 }
  0x23   : > { %954 = dma.done.wait (%p825_p9), [#allocation3], 1024  }
  0x24   : > { %956 = vsyncadd (%p825_p9), [#allocation3], 4294966272  ;;  %p285_p8 = scmp.lt.s32.totalorder %s1044_s28, 1  ;;  %v980_v0 = vmov 0.0   ;;  %vm981_vm0 = vmmov 0   ;;  %v865_v1 = vld [vmem:[%s1198_s1 + $0x8] sm:$0xff]  }
  0x25   : > { %767 = vmatprep.subr.bf16.mxu0 %v980_v0  ;;  %771 = vmatprep.mubr.msk.bf16.mxu0 %vm981_vm0, %v980_v0  ;;  %v866_v2 = vld [vmem:[%s1198_s1] sm:$0xff]   ;;  %vm315_vm1 = vcmask 261120   ;;  %v867_v5 = vld [vmem:[#allocation2 + $0x18] sm:$0xff]   ;;  %v868_v6 = vld [vmem:[#allocation2 + $0x10] sm:$0xff]   ;;  %vm404_vm2 = vcmask 523264   ;;  %s282_s16 = sand.u32 1, %s967_s25  }
  0x26   : > { %s286_s21 = scalar_select %p285_p8, %s1044_s28, 1  ;;  %775 = vmatprep.subr.bf16.mxu1 %v980_v0  ;;  %783 = vmatprep.mubr.msk.bf16.mxu1 %vm981_vm0, %v980_v0  ;;  %v869_v7 = vld [vmem:[#allocation2 + $0x8] sm:$0xff]   ;;  %v870_v8 = vld [vmem:[#allocation2] sm:$0xff]   ;;  %v871_v21 = vld [vmem:[#allocation2 + $0x38] sm:$0xff]  }
  0x27   : > { %768 = vmatpush3.bf16.msra.mxu0 %v865_v1  ;;  %776 = vmatpush3.bf16.msra.mxu1 %v867_v5  ;;  %v722_v9 = vld [vmem:[%s1199_s2] ss:$0 sm:$0xff]  ;;  %v872_v22 = vld [vmem:[#allocation2 + $0x30] sm:$0xff]   ;;  %v873_v23 = vld [vmem:[#allocation2 + $0x28] sm:$0xff]   ;;  %s720_s17 = sshll.u32 %s282_s16, 3  ;;  %s746_s20 = sshll.u32 %s1044_s28, 7 }
  0x28   : > { %s721_s22 = sshll.u32 %s286_s21, 3  ;;  %769 = vmatprep.subr.bf16.mxu0 %v980_v0  ;;  %777 = vmatprep.subr.bf16.mxu1 %v980_v0  ;;  %v874_v24 = vld [vmem:[#allocation2 + $0x20] sm:$0xff]   ;;  %v875_v38 = vld [vmem:[%s1202_s5 + $0x18] sm:$0xff]   ;;  %v876_v39 = vld [vmem:[%s1202_s5 + $0x10] sm:$0xff]   ;;  %s284_s21 = scalar_lea.vmem [#allocation5], %s720_s17 }
  0x29   : > { %s288_s8 = scalar_lea.vmem %s1197_s0, %s721_s22  ;;  %v726_v25 = vld [vmem:[%s1201_s4] ss:$0 sm:$0xff]  ;;  %v877_v40 = vld [vmem:[%s1202_s5 + $0x8] sm:$0xff]   ;;  %v733_v42 = vld [vmem:[%s1201_s4 + $0x1] ss:$0 sm:$0xff]  ;;  %s643_s22 = sshll.u32 %s284_s21, 4  ;;  %s1157_s22 = int_to_ptr.vmem [resolvable:$true] %s643_s22 }
  0x2a   : > { %v290_v3 = vld [vmem:[%s288_s8] sm:$0xff]  ;;  %s1155_s8 = scalar_lea.hbm %s1204_s7, %s746_s20  ;;  %s630_s9 = scalar_lea.sflag [#allocation4], %s282_s16 }
  0x2b   : > { %v291_v4 = vpack.c.bf16 %v290_v3, %v290_v3  ;;  %770 = vmatpush3.bf16.msra.mxu0 %v866_v2  ;;  %778 = vmatpush3.bf16.msra.mxu1 %v868_v6  ;;  %v878_v41 = vld [vmem:[%s1202_s5] sm:$0xff]   ;;  %s911_s28 = scalar_lea.vmem %s1157_s22, 128  ;;  %s982_s13 = smov [#allocation5]  }
  0x2c   : > { %787 = vmatprep.subr.bf16.mxu0 %v980_v0  ;;  %779 = vmatprep.subr.bf16.mxu1 %v980_v0  ;;  %v739_v55 = vld [vmem:[%s1203_s6] ss:$0 sm:$0xff]  ;;  %p912_p6 = scmp.ne.s32.totalorder %s1157_s22, %s911_s28  ;;  %s915_s14 = sshll.u32 %s982_s13, 4  ;;  %s916_s14 = int_to_ptr.vmem [resolvable:$false] %s915_s14 }
  0x2d   : > { %s917_s15 = scalar_lea.vmem %s916_s14, 256  ;;  %p918_p11 = scmp.lt.s32.totalorder %s1157_s22, %s916_s14 }
  0x2e   : > { %772 = vmatmul.mubr.msk.bf16.vlgmr.msra.gmra.mxu0 %vm315_vm1, %v291_v4  ;;  %p913_p9 = pnand %p912_p6, %p1061_p5  ;;  %p919_p12 = scmp.lt.s32.totalorder %s917_s15, %s911_s28 }
  0x2f   : > { %795 = vmatprep.mubr.msk.bf16.mxu0 %vm981_vm0, %v980_v0  ;;  %780 = vmatpush3.bf16.msra.mxu1 %v869_v7 }
  0x30   : > { %781 = vmatprep.subr.bf16.mxu1 %v980_v0  ;;  %788 = vmatpush3.bf16.msra.mxu0 %v871_v21  ;;  %p914_p10 = pneg %p913_p9  ;;  %p920_p13 = por %p919_p12, %p918_p11 }
  0x31   : > { %789 = vmatprep.subr.bf16.mxu0 %v980_v0 }
  0x32   : > { %p921_p0 = pnand %p920_p13, %p914_p10 }
  0x33   : > { %782 = vmatpush3.bf16.msra.mxu1 %v870_v8 }
  0x34   : > { %799 = vmatprep.subr.bf16.mxu1 %v980_v0  ;;  %790 = vmatpush3.bf16.msra.mxu0 %v872_v22 }
  0x35   : > { %791 = vmatprep.subr.bf16.mxu0 %v980_v0 }
  0x38   : > { %792 = vmatpush3.bf16.msra.mxu0 %v873_v23 }
  0x39   : > { %793 = vmatprep.subr.bf16.mxu0 %v980_v0 }
  0x3c   : > { %794 = vmatpush3.bf16.msra.mxu0 %v874_v24 }
  0xee   : > { %v353_v10 = vpop.f32.mrf.mxu0 }
  0xef   : > { %v354_v11 = vadd.f32 %v722_v9, %v353_v10 }
  0xf0   : > { %v773_v12 = vpop.f32.mrf.mxu0 }
  0xf1   : > { %v360_v13 = vmul.f32 0.70710677, %v354_v11  ;;  %v359_v17 = vmul.f32 0.5, %v354_v11 }
  0xf2   : > { %v356_v14 = vpop.f32.mrf.mxu0 }
  0xf3   : > { %879 = verf.f32 %v360_v13 }
  0xf4   : > { %v774_v15 = vpop.f32.mrf.mxu0 }
 0x100   : > { %v880_v16 = vpop.eup %879 }
 0x101   : > { %v362_v18 = vadd.f32 1.0, %v880_v16 }
 0x103   : > { %v363_v19 = vmul.f32 %v362_v18, %v359_v17 }
 0x105   : > { %v364_v20 = vpack.c.bf16 %v363_v19, %v363_v19 }
 0x107   : > { %784 = vmatmul.mubr.msk.bf16.vlgmr.msra.gmra.mxu1 %vm404_vm2, %v364_v20 }
 0x108   : > { %807 = vmatprep.mubr.msk.bf16.mxu1 %vm981_vm0, %v980_v0  ;;  %800 = vmatpush3.bf16.msra.mxu1 %v875_v38 }
 0x109   : > { %801 = vmatprep.subr.bf16.mxu1 %v980_v0 }
 0x10c   : > { %802 = vmatpush3.bf16.msra.mxu1 %v876_v39 }
 0x10d   : > { %803 = vmatprep.subr.bf16.mxu1 %v980_v0 }
 0x110   : > { %804 = vmatpush3.bf16.msra.mxu1 %v877_v40 }
 0x111   : > { %805 = vmatprep.subr.bf16.mxu1 %v980_v0 }
 0x114   : > { %806 = vmatpush3.bf16.msra.mxu1 %v878_v41 }
 0x1c7   : > { %v442_v26 = vpop.f32.mrf.mxu1 }
 0x1c8   : > { %v443_v27 = vadd.f32 %v726_v25, %v442_v26 }
 0x1c9   : > { %v785_v28 = vpop.f32.mrf.mxu1 }
 0x1ca   : > { %v449_v29 = vmul.f32 0.70710677, %v443_v27  ;;  %v448_v33 = vmul.f32 0.5, %v443_v27 }
 0x1cb   : > { %v445_v30 = vpop.f32.mrf.mxu1 }
 0x1cc   : > { %881 = verf.f32 %v449_v29 }
 0x1cd   : > { %v786_v31 = vpop.f32.mrf.mxu1 }
 0x1d9   : > { %v882_v32 = vpop.eup %881 }
 0x1da   : > { %v451_v34 = vadd.f32 1.0, %v882_v32 }
 0x1dc   : > { %v452_v35 = vmul.f32 %v451_v34, %v448_v33 }
 0x1de   : > { %v453_v36 = vadd.f32 %v452_v35, %v363_v19 }
 0x1e0   : > { %v454_v37 = vpack.c.bf16 %v453_v36, %v453_v36 }
 0x1e2   : > { %796 = vmatmul.mubr.msk.bf16.vlgmr.msra.gmra.mxu0 %vm404_vm2, %v454_v37 }
 0x2a2   : > { %v533_v43 = vpop.f32.mrf.mxu0 }
 0x2a3   : > { %v534_v44 = vadd.f32 %v733_v42, %v533_v43 }
 0x2a4   : > { %v797_v45 = vpop.f32.mrf.mxu0 }
 0x2a5   : > { %v540_v46 = vmul.f32 0.70710677, %v534_v44  ;;  %v539_v50 = vmul.f32 0.5, %v534_v44 }
 0x2a6   : > { %v536_v47 = vpop.f32.mrf.mxu0 }
 0x2a7   : > { %883 = verf.f32 %v540_v46 }
 0x2a8   : > { %v798_v48 = vpop.f32.mrf.mxu0 }
 0x2b4   : > { %v884_v49 = vpop.eup %883 }
 0x2b5   : > { %v542_v51 = vadd.f32 1.0, %v884_v49 }
 0x2b7   : > { %v543_v52 = vmul.f32 %v542_v51, %v539_v50 }
 0x2b9   : > { %v544_v53 = vadd.f32 %v543_v52, %v453_v36 }
 0x2bb   : > { %v545_v54 = vpack.c.bf16 %v544_v53, %v544_v53 }
 0x2bd   : > { %808 = vmatmul.mubr.msk.bf16.vlgmr.msra.gmra.mxu1 %vm404_vm2, %v545_v54 }
 0x37d   : > { %v622_v56 = vpop.f32.mrf.mxu1 }
 0x37e   : > { %v623_v57 = vadd.f32 %v739_v55, %v622_v56 }
 0x37f   : > { %v809_v58 = vpop.f32.mrf.mxu1 }
 0x380   : > { %628 = vst.msk [vmem:[%s284_s21] sm:$0xff] %vm315_vm1, %v623_v57 }
 0x381   : > { %v625_v59 = vpop.f32.mrf.mxu1 }
 0x382   : > { %924 = shalt.err (!%p921_p0)
}
 0x383   : > { %s925_s17 = scalar_lea.hbm %s1155_s8, 128  ;;  %s929_s19 = scalar_lea.hbm %s1204_s7, 256 }
 0x384   : > { %p926_p1 = scmp.ne.s32.totalorder %s1155_s8, %s925_s17  ;;  %p930_p4 = scmp.lt.s32.totalorder %s1155_s8, %s1204_s7 }
 0x385   : > { %p931_p7 = scmp.lt.s32.totalorder %s929_s19, %s925_s17 }
 0x386   : > { %p927_p2 = pnand %p926_p1, %p1061_p5 }
 0x387   : > { %p932_p8 = por %p931_p7, %p930_p4 }
 0x388   : > { %p928_p3 = pneg %p927_p2 }
 0x38a   : > { %p933_p6 = pnand %p932_p8, %p928_p3 }
 0x38c   : > { %936 = shalt.err (!%p933_p6)
}
 0x38d   : > { %815 = dma.vmem_to_hbm [thread:$0]  (%p1061_p5), %s1157_s22, 128, %s1155_s8, %s630_s9   ;;  %v810_v60 = vpop.f32.mrf.mxu1 }
 0x38e PF: > { %p827_p9 = scmp.ge.s32.totalorder %s975_s27, 2  ;;  %s655_s23 = sand.u32 1, %s963_s24  }
 0x38f   : > { %p1208_p10 = scmp.ne.s32.totalorder %s1206_s12, 0  ;;  %s656_s29 = scalar_lea.sflag [#allocation4], %s655_s23 }
 0x391   : > { %p822_p11 = pnand %p827_p9, %p1208_p10 }
 0x393   : > { %p823_p12 = pneg %p822_p11 }
 0x395   : > { %958 = dma.done.wait (%p823_p12), %s656_s29, 128  }
 0x396   : > { %960 = vsyncadd (%p823_p12), %s656_s29, 4294967168  ;;  %p18_p13 = scmp.ge.s32.totalorder %s1048_s30, 4   ;;  %s1209_s24 = smov %s967_s25 }
 0x397   : > { %s1210_s25 = smov %s971_s26  ;;  %s1211_s26 = smov %s1059_s10 }
 0x398   : > { %s1212_s27 = smov %s1048_s30  ;;  %20 = sbr.rel (!%p18_p13) target bundleno = 4 (0x4), region = 90 }
 0x39d   :  { %661 = vsyncpa [#allocation3], 1 }
 0x39e   :  { %663 = vsyncpa [#allocation3 + $0x1], 1 }
 0x39f   :  { %664 = vsyncpa [#allocation4], 1 }
 0x3a0   :  { %666 = vsyncpa [#allocation4 + $0x1], 1 }

</bundles_post_ra>
